<compile_context>
chip_gen: v7x
topology: tpu7x:2x2x1
jax: 0.10.0
libtpu: 0.0.40
codegen_flags: <defaults>
</compile_context>

<pallas_src>
import functools

import jax
import jax.numpy as jnp
from jax.experimental import pallas as pl
from jax.experimental.pallas import tpu as pltpu


def _shifted(x, mask_first, mask_last):
    """Zero-padded +/-1 lane shifts of x:(C, L); per-row edges masked to 0."""
    L = x.shape[-1]
    # xm[l] = x[l-1]  (zero at the first cell of each batch row)
    xm = jnp.where(mask_first, 0.0, pltpu.roll(x, shift=1, axis=1))
    # xp[l] = x[l+1]  (zero at the last cell of each batch row);
    # roll by L-1 == roll by -1, kept positive for safety.
    xp = jnp.where(mask_last, 0.0, pltpu.roll(x, shift=L - 1, axis=1))
    return xm, xp


def cnnflux_kernel(uL_ref, uR_ref, w1_ref, b1_ref, w2_ref, b2_ref,
                   w3_ref, b3_ref, o_ref, *, n_cells):
    L = uL_ref.shape[-1]
    lane = jax.lax.broadcasted_iota(jnp.int32, (1, L), 1)
    pos = lane % n_cells                        # cell index within each row
    mask_first = pos == 0                       # left zero-pad locations
    mask_last = pos == (n_cells - 1)            # right zero-pad locations

    # ---- layer 1: Conv1d(2 -> 16, k=3, pad=1) + ReLU, taps fused in one dot.
    x = jnp.concatenate([uL_ref[0], uR_ref[0]], axis=0)          # (2, L)
    xm, xp = _shifted(x, mask_first, mask_last)
    rhs1 = jnp.concatenate([xm, x, xp], axis=0)                  # (6, L)
    h1 = jnp.dot(w1_ref[...], rhs1, preferred_element_type=jnp.float32)
    h1 = jnp.maximum(h1 + b1_ref[...], 0.0)                      # (16, L)

    # ---- layer 2: Conv1d(16 -> 32, k=3, pad=1) + ReLU, taps fused in one dot.
    h1m, h1p = _shifted(h1, mask_first, mask_last)
    rhs2 = jnp.concatenate([h1m, h1, h1p], axis=0)               # (48, L)
    h2 = jnp.dot(w2_ref[...], rhs2, preferred_element_type=jnp.float32)
    h2 = jnp.maximum(h2 + b2_ref[...], 0.0)                      # (32, L)

    # ---- layer 3: Conv1d(32 -> 1, k=1) as VPU multiply + sublane reduce.
    y = jnp.sum(w3_ref[...] * h2, axis=0, keepdims=True) + b3_ref[...]
    o_ref[0] = y                                                 # (1, L)


def _pick_batch_tile(batch, n_cells, target_lanes=8192):
    """Largest divisor of `batch` with TB*n_cells <= target_lanes; prefer
    lane counts that are multiples of 128 (unmasked vector stores)."""
    budget = max(1, target_lanes // max(n_cells, 1))
    divisors = [d for d in range(1, min(batch, budget) + 1) if batch % d == 0]
    if not divisors:
        return 1
    aligned = [d for d in divisors if (d * n_cells) % 128 == 0]
    return max(aligned) if aligned else max(divisors)


def cnnflux_forward(uL, uR, params, *, target_lanes=8192):
    """uL, uR: (B, N) float32. Returns flux (B, N) float32."""
    w1f, b1, w2f, b2, w3c, b3 = params
    B, N = uL.shape
    TB = _pick_batch_tile(B, N, target_lanes)
    G = B // TB
    L = TB * N
    # Free contiguous reshapes: whole batch rows are folded into the lane
    # axis, so conv zero-padding stays a per-row lane mask inside the kernel.
    uL3 = uL.reshape(G, 1, L).astype(jnp.float32)
    uR3 = uR.reshape(G, 1, L).astype(jnp.float32)

    kernel = functools.partial(cnnflux_kernel, n_cells=N)
    out = pl.pallas_call(
        kernel,
        out_shape=jax.ShapeDtypeStruct((G, 1, L), jnp.float32),
        grid_spec=pltpu.PrefetchScalarGridSpec(
            num_scalar_prefetch=0,
            grid=(G,),
            in_specs=[
                pl.BlockSpec((1, 1, L), lambda g: (g, 0, 0)),   # uL slab
                pl.BlockSpec((1, 1, L), lambda g: (g, 0, 0)),   # uR slab
                pl.BlockSpec(w1f.shape, lambda g: (0, 0)),      # (16, 6)
                pl.BlockSpec(b1.shape, lambda g: (0, 0)),       # (16, 1)
                pl.BlockSpec(w2f.shape, lambda g: (0, 0)),      # (32, 48)
                pl.BlockSpec(b2.shape, lambda g: (0, 0)),       # (32, 1)
                pl.BlockSpec(w3c.shape, lambda g: (0, 0)),      # (32, 1)
                pl.BlockSpec(b3.shape, lambda g: (0, 0)),       # (1, 1)
            ],
            out_specs=pl.BlockSpec((1, 1, L), lambda g: (g, 0, 0)),
        ),
        compiler_params=pltpu.CompilerParams(
            dimension_semantics=("parallel",),
            vmem_limit_bytes=32 * 1024 * 1024,
        ),
    )(uL3, uR3, w1f, b1, w2f, b2, w3c, b3)
    return out.reshape(B, N)


def init_params(key, channels=(16, 32), kernel_size=3):
    """kaiming_uniform (relu gain) weights, zero biases (as in CNNFlux.__init__)."""
    in_ch = 2
    keys = jax.random.split(key, 3)
    layer_defs = [(channels[0], in_ch, kernel_size),
                  (channels[1], channels[0], kernel_size),
                  (1, channels[1], 1)]
    raw = []
    for kk, (out_ch, c_in, ks) in zip(keys, layer_defs):
        fan_in = c_in * ks
        bound = jnp.sqrt(2.0) * jnp.sqrt(3.0 / fan_in)   # kaiming_uniform, relu gain
        w = jax.random.uniform(kk, (out_ch, c_in, ks), jnp.float32, -bound, bound)
        b = jnp.zeros((out_ch,), jnp.float32)
        raw.append((w, b))

    (w1, b1), (w2, b2), (w3, b3) = raw
    # Kernel-friendly layouts: fused-tap weights (C_out, 3*C_in) whose columns
    # match the stacked rhs row order [x_{n-1}; x_n; x_{n+1}] (tap-major,
    # channel-minor); column-vector biases; (32, 1) column for the 1x1 conv.
    w1f = jnp.transpose(w1, (0, 2, 1)).reshape(w1.shape[0], -1)   # (16, 6)
    w2f = jnp.transpose(w2, (0, 2, 1)).reshape(w2.shape[0], -1)   # (32, 48)
    w3c = jnp.transpose(w3[:, :, 0])                              # (32, 1)
    kernel_params = (w1f, b1[:, None], w2f, b2[:, None], w3c, b3[:, None])
    return kernel_params, raw


def reference_forward(uL, uR, raw_params):
    """Pure-JAX NCW conv reference (cross-correlation, same padding)."""
    x = jnp.stack([uL, uR], axis=1).astype(jnp.float32)    # (B, C, N)
    (w1, b1), (w2, b2), (w3, b3) = raw_params

    def conv1d(x, w, b):
        out_ch, in_ch, ks = w.shape
        pad = ks // 2
        xp = jnp.pad(x, ((0, 0), (0, 0), (pad, pad)))
        N = x.shape[-1]
        y = jnp.zeros((x.shape[0], out_ch, N), jnp.float32)
        for t in range(ks):
            y = y + jnp.einsum('oc,bcn->bon', w[:, :, t], xp[:, :, t:t + N],
                               precision='highest')
        return y + b[None, :, None]

    h = jax.nn.relu(conv1d(x, w1, b1))
    h = jax.nn.relu(conv1d(h, w2, b2))
    y = conv1d(h, w3, b3)
    return y[:, 0, :]


if __name__ == "__main__":
    key = jax.random.PRNGKey(0)
    kp, kL, kR = jax.random.split(key, 3)

    B, N = 2, 16
    uL = jax.random.uniform(kL, (B, N), jnp.float32) * 2.0
    uR = jax.random.uniform(kR, (B, N), jnp.float32) * 2.0

    kernel_params, raw_params = init_params(kp)

    flux = cnnflux_forward(uL, uR, kernel_params)
    flux = jax.block_until_ready(flux)

    ref = reference_forward(uL, uR, raw_params)
    assert flux.shape == (B, N)
    max_err = float(jnp.max(jnp.abs(flux - ref)))
    assert max_err < 1e-4, f"max abs err {max_err}"

    print("KERNEL_OK")
</pallas_src>

<mosaic_0001>
module attributes {stable_mosaic.version = 11 : i64} {
  func.func @cnnflux_kernel(%arg0: i32, %arg1: memref<1x1x32xf32, #tpu.memory_space<vmem>>, %arg2: memref<1x1x32xf32, #tpu.memory_space<vmem>>, %arg3: memref<16x6xf32, #tpu.memory_space<vmem>>, %arg4: memref<16x1xf32, #tpu.memory_space<vmem>>, %arg5: memref<32x48xf32, #tpu.memory_space<vmem>>, %arg6: memref<32x1xf32, #tpu.memory_space<vmem>>, %arg7: memref<32x1xf32, #tpu.memory_space<vmem>>, %arg8: memref<1x1xf32, #tpu.memory_space<vmem>>, %arg9: memref<1x1x32xf32, #tpu.memory_space<vmem>>) attributes {dimension_semantics = [#tpu.dimension_semantics<parallel>], iteration_bounds = array<i64: 1>, scalar_prefetch = 0 : i64, scratch_operands = 0 : i64, tpu.core_type = #tpu.core_type<tc>, window_params = [{transform_indices = @transform_0, window_bounds = array<i64: 1, 1, 32>}, {transform_indices = @transform_1, window_bounds = array<i64: 1, 1, 32>}, {pipeline_mode = #tpu.pipeline_mode<synchronous>, transform_indices = @transform_2, window_bounds = array<i64: 16, 6>}, {pipeline_mode = #tpu.pipeline_mode<synchronous>, transform_indices = @transform_3, window_bounds = array<i64: 16, 1>}, {pipeline_mode = #tpu.pipeline_mode<synchronous>, transform_indices = @transform_4, window_bounds = array<i64: 32, 48>}, {pipeline_mode = #tpu.pipeline_mode<synchronous>, transform_indices = @transform_5, window_bounds = array<i64: 32, 1>}, {pipeline_mode = #tpu.pipeline_mode<synchronous>, transform_indices = @transform_6, window_bounds = array<i64: 32, 1>}, {pipeline_mode = #tpu.pipeline_mode<synchronous>, transform_indices = @transform_7, window_bounds = array<i64: 1, 1>}, {transform_indices = @transform_8, window_bounds = array<i64: 1, 1, 32>}]} {
    %0 = tpu.iota {dimensions = array<i32: 1>} : vector<1x32xi32>
    %c16_i32 = arith.constant 16 : i32
    %c0_i32 = arith.constant 0 : i32
    %1 = arith.cmpi eq, %c16_i32, %c0_i32 : i32
    %c1_i32 = arith.constant 1 : i32
    %2 = arith.select %1, %c1_i32, %c16_i32 : i32
    %3 = vector.broadcast %2 : i32 to vector<1x32xi32>
    %4 = arith.remsi %0, %3 : vector<1x32xi32>
    %c0_i32_0 = arith.constant 0 : i32
    %5 = vector.broadcast %c0_i32_0 : i32 to vector<1x32xi32>
    %6 = arith.cmpi ne, %4, %5 : vector<1x32xi32>
    %c0_i32_1 = arith.constant 0 : i32
    %7 = vector.broadcast %c0_i32_1 : i32 to vector<1x32xi32>
    %8 = arith.cmpi slt, %4, %7 : vector<1x32xi32>
    %c0_i32_2 = arith.constant 0 : i32
    %9 = arith.cmpi slt, %2, %c0_i32_2 : i32
    %10 = vector.broadcast %9 : i1 to vector<1x32xi1>
    %11 = vector.broadcast %10 : vector<1x32xi1> to vector<1x32xi1>
    %12 = arith.xori %8, %11 : vector<1x32xi1>
    %13 = arith.andi %12, %6 : vector<1x32xi1>
    %14 = vector.broadcast %2 : i32 to vector<1x32xi32>
    %15 = arith.addi %4, %14 : vector<1x32xi32>
    %16 = arith.select %13, %15, %4 : vector<1x32xi1>, vector<1x32xi32>
    %c0_i32_3 = arith.constant 0 : i32
    %17 = vector.broadcast %c0_i32_3 : i32 to vector<1x32xi32>
    %18 = arith.cmpi eq, %16, %17 : vector<1x32xi32>
    %c15_i32 = arith.constant 15 : i32
    %19 = vector.broadcast %c15_i32 : i32 to vector<1x32xi32>
    %20 = arith.cmpi eq, %16, %19 : vector<1x32xi32>
    %c0 = arith.constant 0 : index
    %c0_4 = arith.constant 0 : index
    %c0_5 = arith.constant 0 : index
    %21 = vector.load %arg1[%c0, %c0_4, %c0_5] : memref<1x1x32xf32, #tpu.memory_space<vmem>>, vector<1x1x32xf32>
    %22 = vector.shape_cast %21 : vector<1x1x32xf32> to vector<1x32xf32>
    %c0_6 = arith.constant 0 : index
    %c0_7 = arith.constant 0 : index
    %c0_8 = arith.constant 0 : index
    %23 = vector.load %arg2[%c0_6, %c0_7, %c0_8] : memref<1x1x32xf32, #tpu.memory_space<vmem>>, vector<1x1x32xf32>
    %24 = vector.shape_cast %23 : vector<1x1x32xf32> to vector<1x32xf32>
    %25 = tpu.concatenate %22, %24 in 0 : vector<1x32xf32>, vector<1x32xf32> -> vector<2x32xf32>
    %c1_i32_9 = arith.constant 1 : i32
    %26 = tpu.dynamic_rotate %25 by %c1_i32_9 dim 1 : vector<2x32xf32>, i32 -> vector<2x32xf32>
    %cst = arith.constant 0.000000e+00 : f32
    %27 = vector.shape_cast %18 : vector<1x32xi1> to vector<1x32xi1>
    %28 = vector.broadcast %27 : vector<1x32xi1> to vector<2x32xi1>
    %29 = vector.broadcast %cst : f32 to vector<2x32xf32>
    %30 = arith.select %28, %29, %26 : vector<2x32xi1>, vector<2x32xf32>
    %c31_i32 = arith.constant 31 : i32
    %31 = tpu.dynamic_rotate %25 by %c31_i32 dim 1 : vector<2x32xf32>, i32 -> vector<2x32xf32>
    %cst_10 = arith.constant 0.000000e+00 : f32
    %32 = vector.shape_cast %20 : vector<1x32xi1> to vector<1x32xi1>
    %33 = vector.broadcast %32 : vector<1x32xi1> to vector<2x32xi1>
    %34 = vector.broadcast %cst_10 : f32 to vector<2x32xf32>
    %35 = arith.select %33, %34, %31 : vector<2x32xi1>, vector<2x32xf32>
    %36 = tpu.concatenate %30, %25, %35 in 0 : vector<2x32xf32>, vector<2x32xf32>, vector<2x32xf32> -> vector<6x32xf32>
    %c0_11 = arith.constant 0 : index
    %c0_12 = arith.constant 0 : index
    %37 = vector.load %arg3[%c0_11, %c0_12] : memref<16x6xf32, #tpu.memory_space<vmem>>, vector<16x6xf32>
    %cst_13 = arith.constant dense<0.000000e+00> : vector<16x32xf32>
    %38 = tpu.matmul %37, %36, %cst_13 {dimension_numbers = #tpu.dot_dimension_numbers<[1], [0], [0], [1], [0, 0, 1, 1], [], []>} : vector<16x6xf32>, vector<6x32xf32>, vector<16x32xf32> -> vector<16x32xf32>
    %c0_14 = arith.constant 0 : index
    %c0_15 = arith.constant 0 : index
    %39 = vector.load %arg4[%c0_14, %c0_15] : memref<16x1xf32, #tpu.memory_space<vmem>>, vector<16x1xf32>
    %40 = vector.broadcast %39 : vector<16x1xf32> to vector<16x32xf32>
    %41 = arith.addf %38, %40 : vector<16x32xf32>
    %cst_16 = arith.constant 0.000000e+00 : f32
    %42 = vector.broadcast %cst_16 : f32 to vector<16x32xf32>
    %43 = arith.maximumf %41, %42 : vector<16x32xf32>
    %c1_i32_17 = arith.constant 1 : i32
    %44 = tpu.dynamic_rotate %43 by %c1_i32_17 dim 1 : vector<16x32xf32>, i32 -> vector<16x32xf32>
    %cst_18 = arith.constant 0.000000e+00 : f32
    %45 = vector.shape_cast %18 : vector<1x32xi1> to vector<1x32xi1>
    %46 = vector.broadcast %45 : vector<1x32xi1> to vector<16x32xi1>
    %47 = vector.broadcast %cst_18 : f32 to vector<16x32xf32>
    %48 = arith.select %46, %47, %44 : vector<16x32xi1>, vector<16x32xf32>
    %c31_i32_19 = arith.constant 31 : i32
    %49 = tpu.dynamic_rotate %43 by %c31_i32_19 dim 1 : vector<16x32xf32>, i32 -> vector<16x32xf32>
    %cst_20 = arith.constant 0.000000e+00 : f32
    %50 = vector.shape_cast %20 : vector<1x32xi1> to vector<1x32xi1>
    %51 = vector.broadcast %50 : vector<1x32xi1> to vector<16x32xi1>
    %52 = vector.broadcast %cst_20 : f32 to vector<16x32xf32>
    %53 = arith.select %51, %52, %49 : vector<16x32xi1>, vector<16x32xf32>
    %54 = tpu.concatenate %48, %43, %53 in 0 : vector<16x32xf32>, vector<16x32xf32>, vector<16x32xf32> -> vector<48x32xf32>
    %c0_21 = arith.constant 0 : index
    %c0_22 = arith.constant 0 : index
    %55 = vector.load %arg5[%c0_21, %c0_22] : memref<32x48xf32, #tpu.memory_space<vmem>>, vector<32x48xf32>
    %cst_23 = arith.constant dense<0.000000e+00> : vector<32x32xf32>
    %56 = tpu.matmul %55, %54, %cst_23 {dimension_numbers = #tpu.dot_dimension_numbers<[1], [0], [0], [1], [0, 0, 1, 1], [], []>} : vector<32x48xf32>, vector<48x32xf32>, vector<32x32xf32> -> vector<32x32xf32>
    %c0_24 = arith.constant 0 : index
    %c0_25 = arith.constant 0 : index
    %57 = vector.load %arg6[%c0_24, %c0_25] : memref<32x1xf32, #tpu.memory_space<vmem>>, vector<32x1xf32>
    %58 = vector.broadcast %57 : vector<32x1xf32> to vector<32x32xf32>
    %59 = arith.addf %56, %58 : vector<32x32xf32>
    %cst_26 = arith.constant 0.000000e+00 : f32
    %60 = vector.broadcast %cst_26 : f32 to vector<32x32xf32>
    %61 = arith.maximumf %59, %60 : vector<32x32xf32>
    %c0_27 = arith.constant 0 : index
    %c0_28 = arith.constant 0 : index
    %62 = vector.load %arg7[%c0_27, %c0_28] : memref<32x1xf32, #tpu.memory_space<vmem>>, vector<32x1xf32>
    %63 = vector.broadcast %62 : vector<32x1xf32> to vector<32x32xf32>
    %64 = arith.mulf %63, %61 : vector<32x32xf32>
    %cst_29 = arith.constant dense<0.000000e+00> : vector<32xf32>
    %65 = vector.multi_reduction <add>, %64, %cst_29 [0] : vector<32x32xf32> to vector<32xf32>
    %66 = vector.shape_cast %65 : vector<32xf32> to vector<1x32xf32>
    %c0_30 = arith.constant 0 : index
    %c0_31 = arith.constant 0 : index
    %67 = vector.load %arg8[%c0_30, %c0_31] : memref<1x1xf32, #tpu.memory_space<vmem>>, vector<1x1xf32>
    %68 = vector.broadcast %67 : vector<1x1xf32> to vector<1x32xf32>
    %69 = arith.addf %66, %68 : vector<1x32xf32>
    %c0_32 = arith.constant 0 : index
    %c0_33 = arith.constant 0 : index
    %c0_34 = arith.constant 0 : index
    %70 = vector.load %arg9[%c0_32, %c0_33, %c0_34] : memref<1x1x32xf32, #tpu.memory_space<vmem>>, vector<1x1x32xf32>
    %71 = vector.shape_cast %70 : vector<1x1x32xf32> to vector<1x32xf32>
    %72 = vector.shape_cast %69 : vector<1x32xf32> to vector<1x1x32xf32>
    tpu.vector_store %arg9[%c0_32, %c0_33, %c0_34], %72 {strides = array<i32>} : memref<1x1x32xf32, #tpu.memory_space<vmem>>, vector<1x1x32xf32>,
    return
  }
  func.func @transform_0(%arg0: i32) -> (i32, i32, i32) {
    %c0_i32 = arith.constant 0 : i32
    %c0_i32_0 = arith.constant 0 : i32
    %c0_i32_1 = arith.constant 0 : i32
    return %arg0, %c0_i32, %c0_i32_0 : i32, i32, i32
  }
  func.func @transform_1(%arg0: i32) -> (i32, i32, i32) {
    %c0_i32 = arith.constant 0 : i32
    %c0_i32_0 = arith.constant 0 : i32
    %c0_i32_1 = arith.constant 0 : i32
    return %arg0, %c0_i32, %c0_i32_0 : i32, i32, i32
  }
  func.func @transform_2(%arg0: i32) -> (i32, i32) {
    %c0_i32 = arith.constant 0 : i32
    %c0_i32_0 = arith.constant 0 : i32
    %c0_i32_1 = arith.constant 0 : i32
    return %c0_i32, %c0_i32_0 : i32, i32
  }
  func.func @transform_3(%arg0: i32) -> (i32, i32) {
    %c0_i32 = arith.constant 0 : i32
    %c0_i32_0 = arith.constant 0 : i32
    %c0_i32_1 = arith.constant 0 : i32
    return %c0_i32, %c0_i32_0 : i32, i32
  }
  func.func @transform_4(%arg0: i32) -> (i32, i32) {
    %c0_i32 = arith.constant 0 : i32
    %c0_i32_0 = arith.constant 0 : i32
    %c0_i32_1 = arith.constant 0 : i32
    return %c0_i32, %c0_i32_0 : i32, i32
  }
  func.func @transform_5(%arg0: i32) -> (i32, i32) {
    %c0_i32 = arith.constant 0 : i32
    %c0_i32_0 = arith.constant 0 : i32
    %c0_i32_1 = arith.constant 0 : i32
    return %c0_i32, %c0_i32_0 : i32, i32
  }
  func.func @transform_6(%arg0: i32) -> (i32, i32) {
    %c0_i32 = arith.constant 0 : i32
    %c0_i32_0 = arith.constant 0 : i32
    %c0_i32_1 = arith.constant 0 : i32
    return %c0_i32, %c0_i32_0 : i32, i32
  }
  func.func @transform_7(%arg0: i32) -> (i32, i32) {
    %c0_i32 = arith.constant 0 : i32
    %c0_i32_0 = arith.constant 0 : i32
    %c0_i32_1 = arith.constant 0 : i32
    return %c0_i32, %c0_i32_0 : i32, i32
  }
  func.func @transform_8(%arg0: i32) -> (i32, i32, i32) {
    %c0_i32 = arith.constant 0 : i32
    %c0_i32_0 = arith.constant 0 : i32
    %c0_i32_1 = arith.constant 0 : i32
    return %arg0, %c0_i32, %c0_i32_0 : i32, i32, i32
  }
}

</mosaic_0001>

<bundles_post_ra>
// kernel: tpu_custom_call.1
= control target key start
LH: loop header
LB: loop body
LE: loop exit
PB: predicated region body
PF: predicated region fallthrough
CT: control target
= control target key end

     0   :  { %s701_s0 = inlined_call_operand.vmem [shape: f32[1,1,32], index: 0, kind: input, shape index: {}]   ;;  %s702_s1 = inlined_call_operand.vmem [shape: f32[1,1,32], index: 1, kind: input, shape index: {}]   ;;  %s703_s2 = inlined_call_operand.vmem [shape: f32[16,6], index: 2, kind: input, shape index: {}]   ;;  %s704_s3 = inlined_call_operand.vmem [shape: f32[16,1], index: 3, kind: input, shape index: {}]   ;;  %s705_s4 = inlined_call_operand.vmem [shape: f32[32,48], index: 4, kind: input, shape index: {}]   ;;  %s706_s5 = inlined_call_operand.vmem [shape: f32[32,1], index: 5, kind: input, shape index: {}]   ;;  %s707_s6 = inlined_call_operand.vmem [shape: f32[32,1], index: 6, kind: input, shape index: {}]   ;;  %s708_s7 = inlined_call_operand.<no memory space> [shape: f32[1,1], index: 7, kind: input, shape index: {}]   ;;  %s709_s8 = inlined_call_operand.hbm [shape: f32[1,1,32], index: 8, kind: output, shape index: {}]  }
   0x1   :  { %v13_v0 = vstv %s708_s7 }
   0x2   :  { %14 = vst [vmem:[#allocation2] sm:$0x1] %v13_v0 }
   0x3   :  { %v48_v1 = vld [vmem:[%s701_s0] sm:$0x1]  ;;  %vm56_vm0 = vcmask 1040384  }
   0x4   :  { %v419_v2 = vld [vmem:[%s702_s1] ss:$0 sm:$0xff] }
   0x5   :  { %v57_v3 = vsel %vm56_vm0, %v48_v1, %v419_v2 }
   0x6   :  { %15 = vsyncpa [#allocation4], 0  ;;  %s544_s11 = smov 32   ;;  %vm58_vm1 = vcmask 1047808   ;;  %v88_v6 = vld [vmem:[%s703_s2] sm:$0xff]  ;;  %vm102_vm2 = vcmask 48128   ;;  %v32_v12 = vlaneseq }
   0x7   :  { %59 = vrot.lane.b32.xlu0 %v57_v3, %s544_s11  ;;  %450 = vmatprep.mubr.msk.f32.mxu0 %vm102_vm2, %v88_v6  ;;  %v90_v7 = vld [vmem:[%s704_s3] sm:$0xff]  ;;  %v545_v8 = vmov 0   ;;  %s546_s13 = smov 127   ;;  %s547_s14 = smov 97   ;;  %v91_v11 = vld [vmem:[%s704_s3 + $0x8] sm:$0xff]  ;;  %v79_v19 = vrot.slane %v57_v3, 6 }
   0x8   :  { %499 = vset.pattern.permute.xlu1 %v545_v8  ;;  %498 = vset.pattern.permute.xlu0 %v545_v8  ;;  %v33_v13 = vand.u32 127, %v32_v12  ;;  %vm84_vm5 = vcmask 1041408   ;;  %vm86_vm6 = vcmask 1043456   ;;  %vm109_vm7 = vcmask 1045504   ;;  %v89_v25 = vld [vmem:[%s703_s2 + $0x8] sm:$0xff]  ;;  %v220_v47 = vld [vmem:[%s705_s4] sm:$0xff] }
   0x9   :  { %vm248_vm8 = vcmask 392192   ;;  %v222_v48 = vld [vmem:[%s705_s4 + $0x10] sm:$0xff]  ;;  %v225_v49 = vld [vmem:[%s706_s5 + $0x8] sm:$0xff]  ;;  %v224_v50 = vld [vmem:[%s706_s5] sm:$0xff]  ;;  %vm378_vm13 = vcmask 261120   ;;  %vm403_vm14 = vcmask 253952  }
   0xa   :  { %v38_v14 = vand.u32 15, %v33_v13  ;;  %468 = vmatprep.mubr.msk.f32.mxu1 %vm248_vm8, %v222_v48  ;;  %v227_v51 = vld [vmem:[%s706_s5 + $0x18] sm:$0xff]  ;;  %v226_v52 = vld [vmem:[%s706_s5 + $0x10] sm:$0xff]  ;;  %v351_v53 = vld [vmem:[%s707_s6 + $0x8] sm:$0xff] }
   0xb   :  { %v350_v54 = vld [vmem:[%s707_s6] sm:$0xff]  ;;  %v353_v55 = vld [vmem:[%s707_s6 + $0x18] sm:$0xff]  ;;  %v352_v56 = vld [vmem:[%s707_s6 + $0x10] sm:$0xff] }
   0xc   :  { %vm620_vm3 = vcmp.eq.s32.totalorder %v38_v14, 15  ;;  %vm626_vm4 = vcmp.eq.s32.totalorder %v38_v14, 0  ;;  %v392_v57 = vld [vmem:[#allocation2] sm:$0x1] }
   0xd   :  { %vm423_vm9 = vmneg %vm626_vm4 }
   0xe   :  { %vm472_vm10 = vmpackc.low %vm423_vm9, %vm423_vm9 }
   0xf   :  { %vm427_vm11 = vmneg %vm620_vm3 }
  0x10   :  { %vm482_vm12 = vmpackc.low %vm427_vm11, %vm427_vm11 }
  0x79   :  { %v60_v4 = vpop.permute.xlu0 %59 }
  0x7a   :  { %v61_v5 = vsel %vm58_vm1, %v60_v4, %v57_v3  ;;  %v223_v4 = vld [vmem:[%s705_s4 + $0x18] sm:$0xff] }
  0x7b   :  { %62 = vrot.lane.b32.xlu0 %v61_v5, %s544_s11 }
  0x7f   :  { %94 = vperm.xlu0 %498, %v90_v7  }
  0xed   :  { %v63_v9 = vpop.permute.xlu0 %62 }
  0xee   :  { %v64_v10 = vsel %vm58_vm1, %v63_v9, %v57_v3  ;;  %v221_v3 = vld [vmem:[%s705_s4 + $0x8] sm:$0xff]  ;;  %s548_s4 = smov [#allocation3]  }
  0xef   :  { %74 = vrot.lane.b32.xlu1 %v64_v10, %s546_s13 }
  0xf3   :  { %68 = vrot.lane.b32.xlu1 %v64_v10, %s547_s14 }
  0xf7   :  { %99 = vperm.xlu1 %499, %v91_v11  }
  0xfe   :  { %v95_v27 = vpop.permute.xlu0 %94 }
 0x161   :  { %v75_v16 = vpop.permute.xlu1 %74 }
 0x162   :  { %v77_v17 = vsel %vm620_vm3, 0.0, %v75_v16 }
 0x163   :  { %v82_v21 = vrot.slane %v77_v17, 4 }
 0x165   :  { %v69_v20 = vpop.permute.xlu1 %68 }
 0x166   :  { %v71_v22 = vsel %vm626_vm4, 0.0, %v69_v20 }
 0x167   :  { %v85_v23 = vsel %vm84_vm5, %v71_v22, %v79_v19 }
 0x168   :  { %v87_v24 = vsel %vm86_vm6, %v85_v23, %v82_v21 }
 0x169   :  { %448 = vmatprep.subr.msk.mxu0 %vm109_vm7, %v87_v24 }
 0x16a   :  { %449 = vmatpush3.msk.msra.mxu0 %vm109_vm7, %v87_v24 }
 0x16b   :  { %451 = vmatmul.mubr.msk.f32.vlgmr.msra.gmra.mrb[0].mxu0 %vm102_vm2, %v89_v25 }
 0x16c   :  { %465 = vmatprep.mubr.msk.f32.mxu0 %vm248_vm8, %v220_v47 }
 0x176   :  { %v100_v26 = vpop.permute.xlu1 %99 }
 0x23e   :  { %v452_v28 = vpop.f32.mrb[0].mxu0 }
 0x23f   :  { %v185_v29 = vadd.f32 %v452_v28, %v100_v26  ;;  %v179_v30 = vpop.f32.mrb[1].mxu0 }
 0x240   :  { %v180_v31 = vadd.f32 %v179_v30, %v95_v27 }
 0x241   :  { %v189_v32 = vmax.f32 %v185_v29, 0.0 }
 0x242   :  { %v188_v33 = vmax.f32 %v180_v31, 0.0 }
 0x244   :  { %v500_v34 = vpack.i.bf16 %v189_v32, %v188_v33  ;;  %v477_v1 = vpack.c.bf16 %v189_v32, %v188_v33 }
 0x246   :  { %501 = vrot.lane.b32.xlu1 %v500_v34, %s544_s11 }
 0x2b8   :  { %v502_v35 = vpop.permute.xlu1 %501 }
 0x2b9   :  { %v504_v36 = vunpack.i.h.bf16 %v502_v35  ;;  %v503_v37 = vunpack.i.l.bf16 %v502_v35 }
 0x2bb   :  { %v192_v38 = vsel %vm58_vm1, %v503_v37, %v188_v33  ;;  %v195_v39 = vsel %vm58_vm1, %v504_v36, %v189_v32 }
 0x2bc   :  { %v505_v40 = vpack.i.bf16 %v195_v39, %v192_v38  ;;  %v399_v38 = vshrl.u32 %v32_v12, 7 }
 0x2be   :  { %506 = vrot.lane.b32.xlu0 %v505_v40, %s544_s11 }
 0x330   :  { %v507_v41 = vpop.permute.xlu0 %506 }
 0x331   :  { %v509_v42 = vunpack.i.h.bf16 %v507_v41  ;;  %v508_v43 = vunpack.i.l.bf16 %v507_v41  ;;  %v400_v41 = vsub.s32 0, %v399_v38 }
 0x333   :  { %v200_v44 = vsel %vm58_vm1, %v508_v43, %v188_v33  ;;  %v201_v45 = vsel %vm58_vm1, %v509_v42, %v189_v32 }
 0x334   :  { %v515_v46 = vpack.i.bf16 %v201_v45, %v200_v44 }
 0x336   :  { %516 = vrot.lane.b32.xlu0 %v515_v46, %s546_s13  ;;  %511 = vrot.lane.b32.xlu1 %v515_v46, %s547_s14  ;;  %s411_s14 = sshll.u32 %s548_s4, 4  ;;  %s412_s14 = int_to_ptr.vmem [resolvable:$true] %s411_s14 }
 0x337   :  { %s520_s15 = scalar_lea.vmem %s412_s14, 16  ;;  %s524_s16 = scalar_lea.vmem %s412_s14, 32 }
 0x338   :  { %p521_p0 = scmp.ne.s32.totalorder %s412_s14, %s520_s15  ;;  %p525_p1 = scmp.lt.s32.totalorder %s412_s14, %s412_s14 }
 0x339   :  { %p526_p2 = scmp.lt.s32.totalorder %s524_s16, %s520_s15 }
 0x33a   :  { %235 = vperm.xlu0 %498, %v225_v49   ;;  %230 = vperm.xlu1 %499, %v224_v50  }
 0x33b   :  { %p527_p3 = por %p526_p2, %p525_p1 }
 0x33d   :  { %p528_p4 = pnand %p527_p3, %p521_p0 }
 0x33e   :  { %245 = vperm.xlu0 %498, %v227_v51   ;;  %240 = vperm.xlu1 %499, %v226_v52  }
 0x342   :  { %361 = vperm.xlu0 %498, %v351_v53   ;;  %356 = vperm.xlu1 %499, %v350_v54  }
 0x346   :  { %371 = vperm.xlu0 %498, %v353_v55   ;;  %366 = vperm.xlu1 %499, %v352_v56  }
 0x34a   :  { %395 = vperm.xlu1 %499, %v392_v57  }
 0x3a8   :  { %v512_v58 = vpop.permute.xlu1 %511  ;;  %v517_v61 = vpop.permute.xlu0 %516 }
 0x3a9   :  { %v514_v59 = vunpack.i.h.bf16 %v512_v58  ;;  %v513_v60 = vunpack.i.l.bf16 %v512_v58  ;;  %v519_v63 = vunpack.i.h.bf16 %v517_v61  ;;  %v518_v0 = vunpack.i.l.bf16 %v517_v61 }
 0x3ab   :  { %v471_v62 = vpack.c.bf16 %v514_v59, %v513_v60  ;;  %v481_v2 = vpack.c.bf16 %v519_v63, %v518_v0 }
 0x3ad   :  { %473 = vmatprep.subr.msk.bf16.mxu0 %vm472_vm10, %v471_v62  ;;  %487 = vmatprep.subr.msk.bf16.mxu1 %vm472_vm10, %v471_v62 }
 0x3ae   :  { %476 = vmatpush3.bf16.msk.msra.mxu0 %vm472_vm10, %v471_v62  ;;  %490 = vmatpush3.bf16.msk.msra.mxu1 %vm472_vm10, %v471_v62 }
 0x3af   :  { %478 = vmatprep.subr.bf16.mxu0 %v477_v1  ;;  %488 = vmatprep.subr.bf16.mxu1 %v477_v1 }
 0x3b2   :  { %480 = vmatpush3.bf16.msra.mxu0 %v477_v1  ;;  %491 = vmatpush3.bf16.msra.mxu1 %v477_v1 }
 0x3b3   :  { %483 = vmatprep.subr.msk.bf16.mxu0 %vm482_vm12, %v481_v2  ;;  %489 = vmatprep.subr.msk.bf16.mxu1 %vm482_vm12, %v481_v2 }
 0x3b6   :  { %486 = vmatpush3.bf16.msk.msra.mxu0 %vm482_vm12, %v481_v2  ;;  %492 = vmatpush3.bf16.msk.msra.mxu1 %vm482_vm12, %v481_v2 }
 0x3b9   :  { %466 = vmatmul.mubr.msk.f32.vlgmr.msra.gmra.mrb[2].mxu0 %vm248_vm8, %v221_v3  ;;  %469 = vmatmul.mubr.msk.f32.vlgmr.msra.gmra.mrb[0].mxu1 %vm248_vm8, %v223_v4  ;;  %v236_v5 = vpop.permute.xlu0 %235  ;;  %v231_v6 = vpop.permute.xlu1 %230 }
 0x3bd   :  { %v246_v7 = vpop.permute.xlu0 %245  ;;  %v241_v8 = vpop.permute.xlu1 %240 }
 0x3c1   :  { %v362_v9 = vpop.permute.xlu0 %361  ;;  %v357_v10 = vpop.permute.xlu1 %356 }
 0x3c5   :  { %v367_v24 = vpop.permute.xlu1 %366  ;;  %v372_v28 = vpop.permute.xlu0 %371 }
 0x3c9   :  { %v396_v43 = vpop.permute.xlu1 %395 }
 0x3ca   :  { %v401_v45 = vrot.slane %v396_v43, %v400_v41 }
 0x48c   :  { %v467_v11 = vpop.f32.mrb[2].mxu0  ;;  %v470_v13 = vpop.f32.mrb[0].mxu1 }
 0x48d   :  { %v333_v14 = vadd.f32 %v467_v11, %v236_v5  ;;  %v343_v15 = vadd.f32 %v470_v13, %v246_v7  ;;  %v327_v16 = vpop.f32.mrb[3].mxu0  ;;  %v337_v17 = vpop.f32.mrb[1].mxu1 }
 0x48e   :  { %v328_v18 = vadd.f32 %v327_v16, %v231_v6  ;;  %v338_v19 = vadd.f32 %v337_v17, %v241_v8 }
 0x48f   :  { %v347_v20 = vmax.f32 %v333_v14, 0.0  ;;  %v349_v21 = vmax.f32 %v343_v15, 0.0 }
 0x490   :  { %v346_v22 = vmax.f32 %v328_v18, 0.0  ;;  %v348_v23 = vmax.f32 %v338_v19, 0.0 }
 0x491   :  { %v375_v25 = vmul.f32 %v362_v9, %v347_v20  ;;  %v377_v30 = vmul.f32 %v372_v28, %v349_v21 }
 0x492   :  { %v374_v26 = vmul.f32 %v357_v10, %v346_v22  ;;  %v376_v27 = vmul.f32 %v367_v24, %v348_v23 }
 0x493   :  { %v380_v29 = vsel %vm378_vm13, %v375_v25, 0.0  ;;  %v384_v35 = vsel %vm378_vm13, %v377_v30, 0.0 }
 0x494   :  { %v379_v31 = vsel %vm378_vm13, %v374_v26, 0.0  ;;  %v382_v33 = vsel %vm378_vm13, %v376_v27, 0.0 }
 0x495   :  { %v381_v32 = vadd.f32 %v380_v29, %v379_v31 }
 0x497   :  { %v383_v34 = vadd.f32 %v382_v33, %v381_v32 }
 0x499   :  { %v385_v36 = vadd.f32 %v384_v35, %v383_v34 }
 0x49b   :  { %v386_v37 = vrot.slane %v385_v36, 4 }
 0x49d   :  { %v387_v39 = vadd.f32 %v386_v37, %v385_v36 }
 0x49f   :  { %v388_v40 = vrot.slane %v387_v39, 2 }
 0x4a1   :  { %v389_v42 = vadd.f32 %v388_v40, %v387_v39 }
 0x4a3   :  { %v390_v44 = vrot.slane %v389_v42, 1 }
 0x4a5   :  { %v391_v46 = vadd.f32 %v390_v44, %v389_v42 }
 0x4a7   :  { %v402_v47 = vadd.f32 %v401_v45, %v391_v46 }
 0x4a9   :  { %404 = vst.msk [vmem:[#allocation3] sm:$0x1] %vm403_vm14, %v402_v47 }
 0x4aa   :  { %531 = shalt.err (!%p528_p4)
}
 0x4ab   :  { %s532_s2 = scalar_lea.hbm %s709_s8, 16 }
 0x4ac   :  { %p533_p5 = scmp.ne.s32.totalorder %s709_s8, %s532_s2  ;;  %p536_p6 = scmp.lt.u32.totalorder %s532_s2, %s709_s8 }
 0x4ae   :  { %p538_p7 = pnand %p536_p6, %p533_p5 }
 0x4b0   :  { %541 = shalt.err (!%p538_p7)
}
 0x4b1   :  { %414 = dma.vmem_to_hbm [thread:$0]  %s412_s14, 16, %s709_s8, [#allocation4]  }
 0x4b2   :  { %542 = dma.done.wait [#allocation4], 16  }
 0x4b3   :  { %543 = vsyncadd [#allocation4], 4294967280 }
 0x4b4   :  { %418 = vsyncpa [#allocation4], 1 }

</bundles_post_ra>
